<compile_context>
chip_gen: v7x
topology: tpu7x:2x2x1
jax: 0.10.0
libtpu: 0.0.40
codegen_flags: <defaults>
</compile_context>

<pallas_src>
import math
from functools import partial

import jax
import jax.numpy as jnp
from jax.experimental import pallas as pl
from jax.experimental.pallas import tpu as pltpu


def _cdiv(a, b):
    return -(-a // b)


def _round_up(n, m):
    return ((n + m - 1) // m) * m


def _softmax_ce_kernel(x_ref, w_ref, b_ref, lab_ref, loss_ref, corr_ref,
                       m_ref, l_ref, cl_ref, *, batch, tile_rows, tile_cols):
    """One (batch tile, class tile) grid step.

    Online-softmax over the class grid axis:
      m_ref  (TB,1) running max of logits
      l_ref  (TB,1) running sum(exp(logits - m))
      cl_ref (TB,1) logit at the true label (lands in exactly one class tile)
    The last class tile writes this batch tile's partial [sum CE, #correct]
    into its own grid-indexed SMEM output block (no cross-tile accumulator,
    so the batch axis can be "parallel").
    """
    i = pl.program_id(0)
    k = pl.program_id(1)
    nk = pl.num_programs(1)

    @pl.when(k == 0)
    def _init():
        m_ref[...] = jnp.full_like(m_ref, -jnp.inf)
        l_ref[...] = jnp.zeros_like(l_ref)
        cl_ref[...] = jnp.zeros_like(cl_ref)

    x = x_ref[...]            # (TB, D)  bf16
    w = w_ref[...]            # (D, TC)  bf16 (streamed class tile)
    b = b_ref[...]            # (1, TC)  f32, padded cols = -1e30
    lab = lab_ref[...]        # (TB, 1)  int32

    # Linear layer slice: bf16 MXU matmul, f32 accumulation.
    logits = jnp.dot(x, w, preferred_element_type=jnp.float32) + b   # (TB, TC)

    # Online-softmax update.
    tile_max = jnp.max(logits, axis=-1, keepdims=True)               # (TB, 1)
    m_new = jnp.maximum(m_ref[...], tile_max)
    alpha = jnp.exp(m_ref[...] - m_new)
    # TODO(synk): on v6e/v7x a bf16 exp here would halve EUP cost if the
    # transcendental unit is the saturating slot (keep f32 on v5e).
    l_ref[...] = alpha * l_ref[...] + jnp.sum(
        jnp.exp(logits - m_new), axis=-1, keepdims=True)
    m_ref[...] = m_new

    # Logit at the true label (broadcast (1,TC) iota against (TB,1) labels).
    cls = k * tile_cols + jax.lax.broadcasted_iota(
        jnp.int32, (1, tile_cols), 1)                                 # (1, TC)
    cl_ref[...] += jnp.sum(
        jnp.where(cls == lab, logits, 0.0), axis=-1, keepdims=True)   # (TB, 1)

    @pl.when(k == nk - 1)
    def _finalize():
        # Mask rows that are pure batch padding.
        row = i * tile_rows + jax.lax.broadcasted_iota(
            jnp.int32, (tile_rows, 1), 0)
        valid = (row < batch).astype(jnp.float32)                     # (TB, 1)

        lse = m_ref[...] + jnp.log(l_ref[...])                        # (TB, 1)
        loss_ref[0, 0] = jnp.sum((lse - cl_ref[...]) * valid)
        # Top-1 correct <=> the true-label logit attains the global max
        # (differs from torch.topk first-occurrence only on exact f32 ties).
        corr_ref[0, 0] = jnp.sum(
            (cl_ref[...] >= m_ref[...]).astype(jnp.float32) * valid)


def softmax_loss(x, weight_t, bias, label, *, block_rows=256, block_cols=1024):
    """Forward of losses/Softmax.py. Returns (mean CE loss, top-1 accuracy %).

    x: (B, nOut); weight_t: (nOut, nClasses) (nn.Linear weight transposed);
    bias: (nClasses,); label: (B,) int.
    """
    B, D = x.shape
    C = weight_t.shape[1]
    NEG = -1e30

    # Batch tiling: multiple of 8 sublanes; sized so the last tile is not
    # nearly empty (e.g. B=260 -> TB=136, not 256 with a 252-row pad).
    TB = _round_up(_cdiv(B, _cdiv(B, block_rows)), 8)
    Bp = _round_up(B, TB)

    # Class tiling: lane-dense multiple of 128, streamed across the grid so
    # W is never fully resident and f32 temporaries stay O(TB*TC).
    TC = min(_round_up(block_cols, 128), _round_up(C, 128))
    Cp = _round_up(C, TC)

    nbt = Bp // TB
    nct = Cp // TC

    # Single fused cast+pad per operand (kernel masks invalid rows itself).
    x_bf = x.astype(jnp.bfloat16)
    lab_p = label.astype(jnp.int32).reshape(B, 1)
    if Bp != B:
        x_bf = jnp.pad(x_bf, ((0, Bp - B), (0, 0)))
        lab_p = jnp.pad(lab_p, ((0, Bp - B), (0, 0)))
    w_bf = weight_t.astype(jnp.bfloat16)
    b_f = bias.astype(jnp.float32)
    if Cp != C:
        w_bf = jnp.pad(w_bf, ((0, 0), (0, Cp - C)))
        b_f = jnp.pad(b_f, (0, Cp - C), constant_values=NEG)
    b_f = b_f.reshape(1, Cp)

    # VMEM budget: double-buffered x / W / bias / label blocks, scratch
    # accumulators, plus f32 temporaries over the (TB, TC) tile; headroom but
    # capped well under v7x's 64 MiB physical VMEM.
    vmem_bytes = (
        2 * TB * D * 2        # x blocks (bf16, double-buffered)
        + 2 * D * TC * 2      # W class tiles (bf16, double-buffered)
        + 2 * TC * 4          # bias tiles
        + 2 * TB * 4          # label blocks
        + 3 * TB * 4          # online-softmax accumulators
        + 6 * TB * TC * 4     # f32 temporaries (logits / exp / compare / select)
    )
    vmem_limit = min(int(vmem_bytes * 1.5) + (4 << 20), 48 << 20)

    kernel = partial(_softmax_ce_kernel, batch=B, tile_rows=TB, tile_cols=TC)

    loss_p, corr_p = pl.pallas_call(
        kernel,
        out_shape=(
            jax.ShapeDtypeStruct((nbt, 1), jnp.float32),   # per-tile sum(CE)
            jax.ShapeDtypeStruct((nbt, 1), jnp.float32),   # per-tile #correct
        ),
        grid_spec=pltpu.PrefetchScalarGridSpec(
            num_scalar_prefetch=0,
            grid=(nbt, nct),
            in_specs=[
                pl.BlockSpec((TB, D), lambda i, k: (i, 0)),   # x batch tile
                pl.BlockSpec((D, TC), lambda i, k: (0, k)),   # W class tile
                pl.BlockSpec((1, TC), lambda i, k: (0, k)),   # bias class tile
                pl.BlockSpec((TB, 1), lambda i, k: (i, 0)),   # labels
            ],
            out_specs=(
                pl.BlockSpec((1, 1), lambda i, k: (i, 0),
                             memory_space=pltpu.MemorySpace.SMEM),
                pl.BlockSpec((1, 1), lambda i, k: (i, 0),
                             memory_space=pltpu.MemorySpace.SMEM),
            ),
            scratch_shapes=[
                pltpu.VMEM((TB, 1), jnp.float32),   # running max
                pltpu.VMEM((TB, 1), jnp.float32),   # running sum-exp
                pltpu.VMEM((TB, 1), jnp.float32),   # true-label logit
            ],
        ),
        compiler_params=pltpu.CompilerParams(
            # Batch tiles are independent (v7x can split them across its two
            # TensorCores); the class axis is the online-softmax reduction.
            dimension_semantics=("parallel", "arbitrary"),
            vmem_limit_bytes=vmem_limit,
        ),
    )(x_bf, w_bf, b_f, lab_p)

    # Final mean reduction over per-tile partials (exactly once, by true B).
    loss = jnp.sum(loss_p) / B
    prec = jnp.sum(corr_p) / B * 100.0
    return loss, prec


if __name__ == "__main__":
    # Small shapes consistent with the module: batch=8, nOut=32, nClasses=16
    B, nOut, nClasses = 8, 32, 16

    key = jax.random.PRNGKey(0)
    kx, kw, kb, kl = jax.random.split(key, 4)

    x = jax.random.normal(kx, (B, nOut), dtype=jnp.float32)
    label = jax.random.randint(kl, (B,), 0, nClasses, dtype=jnp.int32)

    # Deterministic nn.Linear-style init: U(-1/sqrt(nOut), 1/sqrt(nOut))
    bound = 1.0 / math.sqrt(nOut)
    weight = jax.random.uniform(kw, (nClasses, nOut), jnp.float32, -bound, bound)
    bias = jax.random.uniform(kb, (nClasses,), jnp.float32, -bound, bound)
    weight_t = weight.T  # (nOut, nClasses) layout for the kernel matmul

    nloss, prec1 = softmax_loss(x, weight_t, bias, label)
    jax.block_until_ready((nloss, prec1))

    # Pure-JAX reference on the same bf16-input / f32-accumulate matmul path.
    logits_ref = jnp.dot(x.astype(jnp.bfloat16), weight_t.astype(jnp.bfloat16),
                         preferred_element_type=jnp.float32) + bias
    lse_ref = jax.scipy.special.logsumexp(logits_ref, axis=-1)
    loss_ref = jnp.mean(lse_ref - logits_ref[jnp.arange(B), label])
    acc_ref = jnp.mean(
        (jnp.argmax(logits_ref, -1) == label).astype(jnp.float32)) * 100.0
    assert jnp.allclose(nloss, loss_ref, atol=1e-3, rtol=1e-3), (nloss, loss_ref)
    assert jnp.allclose(prec1, acc_ref, atol=1e-3), (prec1, acc_ref)

    print("KERNEL_OK")
</pallas_src>

<mosaic_0001>
module attributes {stable_mosaic.version = 11 : i64} {
  func.func @_softmax_ce_kernel(%arg0: i32, %arg1: i32, %arg2: memref<8x32xbf16, #tpu.memory_space<vmem>>, %arg3: memref<32x128xbf16, #tpu.memory_space<vmem>>, %arg4: memref<1x128xf32, #tpu.memory_space<vmem>>, %arg5: memref<8x1xi32, #tpu.memory_space<vmem>>, %arg6: memref<1x1xf32, #tpu.memory_space<smem>>, %arg7: memref<1x1xf32, #tpu.memory_space<smem>>, %arg8: memref<8x1xf32, #tpu.memory_space<vmem>>, %arg9: memref<8x1xf32, #tpu.memory_space<vmem>>, %arg10: memref<8x1xf32, #tpu.memory_space<vmem>>) attributes {dimension_semantics = [#tpu.dimension_semantics<parallel>, #tpu.dimension_semantics<arbitrary>], iteration_bounds = array<i64: 1, 1>, scalar_prefetch = 0 : i64, scratch_operands = 3 : i64, tpu.core_type = #tpu.core_type<tc>, window_params = [{transform_indices = @transform_0, window_bounds = array<i64: 8, 32>}, {transform_indices = @transform_1, window_bounds = array<i64: 32, 128>}, {transform_indices = @transform_2, window_bounds = array<i64: 1, 128>}, {transform_indices = @transform_3, window_bounds = array<i64: 8, 1>}, {transform_indices = @transform_4, window_bounds = array<i64: 1, 1>}, {transform_indices = @transform_5, window_bounds = array<i64: 1, 1>}]} {
    %c0_i32 = arith.constant 0 : i32
    %0 = arith.cmpi eq, %arg1, %c0_i32 : i32
    %1 = arith.extui %0 : i1 to i32
    %c0_i32_0 = arith.constant 0 : i32
    %2 = arith.cmpi ne, %1, %c0_i32_0 : i32
    scf.if %2 {
      %cst_28 = arith.constant 0xFF800000 : f32
      %44 = vector.broadcast %cst_28 : f32 to vector<8x1xf32>
      %c0_29 = arith.constant 0 : index
      %c0_30 = arith.constant 0 : index
      %45 = vector.load %arg8[%c0_29, %c0_30] : memref<8x1xf32, #tpu.memory_space<vmem>>, vector<8x1xf32>
      tpu.vector_store %arg8[%c0_29, %c0_30], %44 {strides = array<i32>} : memref<8x1xf32, #tpu.memory_space<vmem>>, vector<8x1xf32>,
      %cst_31 = arith.constant 0.000000e+00 : f32
      %46 = vector.broadcast %cst_31 : f32 to vector<8x1xf32>
      %c0_32 = arith.constant 0 : index
      %c0_33 = arith.constant 0 : index
      %47 = vector.load %arg9[%c0_32, %c0_33] : memref<8x1xf32, #tpu.memory_space<vmem>>, vector<8x1xf32>
      tpu.vector_store %arg9[%c0_32, %c0_33], %46 {strides = array<i32>} : memref<8x1xf32, #tpu.memory_space<vmem>>, vector<8x1xf32>,
      %cst_34 = arith.constant 0.000000e+00 : f32
      %48 = vector.broadcast %cst_34 : f32 to vector<8x1xf32>
      %c0_35 = arith.constant 0 : index
      %c0_36 = arith.constant 0 : index
      %49 = vector.load %arg10[%c0_35, %c0_36] : memref<8x1xf32, #tpu.memory_space<vmem>>, vector<8x1xf32>
      tpu.vector_store %arg10[%c0_35, %c0_36], %48 {strides = array<i32>} : memref<8x1xf32, #tpu.memory_space<vmem>>, vector<8x1xf32>,
    } else {
    }
    %c0 = arith.constant 0 : index
    %c0_1 = arith.constant 0 : index
    %3 = vector.load %arg2[%c0, %c0_1] : memref<8x32xbf16, #tpu.memory_space<vmem>>, vector<8x32xbf16>
    %c0_2 = arith.constant 0 : index
    %c0_3 = arith.constant 0 : index
    %4 = vector.load %arg3[%c0_2, %c0_3] : memref<32x128xbf16, #tpu.memory_space<vmem>>, vector<32x128xbf16>
    %c0_4 = arith.constant 0 : index
    %c0_5 = arith.constant 0 : index
    %5 = vector.load %arg4[%c0_4, %c0_5] : memref<1x128xf32, #tpu.memory_space<vmem>>, vector<1x128xf32>
    %c0_6 = arith.constant 0 : index
    %c0_7 = arith.constant 0 : index
    %6 = vector.load %arg5[%c0_6, %c0_7] : memref<8x1xi32, #tpu.memory_space<vmem>>, vector<8x1xi32>
    %cst = arith.constant dense<0.000000e+00> : vector<8x128xf32>
    %7 = tpu.matmul %3, %4, %cst {dimension_numbers = #tpu.dot_dimension_numbers<[1], [0], [0], [1], [0, 0, 1, 1], [], []>} : vector<8x32xbf16>, vector<32x128xbf16>, vector<8x128xf32> -> vector<8x128xf32>
    %8 = vector.broadcast %5 : vector<1x128xf32> to vector<8x128xf32>
    %9 = arith.addf %7, %8 : vector<8x128xf32>
    %cst_8 = arith.constant dense<0xFF800000> : vector<8xf32>
    %10 = vector.multi_reduction <maximumf>, %9, %cst_8 [1] : vector<8x128xf32> to vector<8xf32>
    %11 = vector.shape_cast %10 : vector<8xf32> to vector<8x1xf32>
    %c0_9 = arith.constant 0 : index
    %c0_10 = arith.constant 0 : index
    %12 = vector.load %arg8[%c0_9, %c0_10] : memref<8x1xf32, #tpu.memory_space<vmem>>, vector<8x1xf32>
    %13 = arith.maximumf %12, %11 : vector<8x1xf32>
    %c0_11 = arith.constant 0 : index
    %c0_12 = arith.constant 0 : index
    %14 = vector.load %arg8[%c0_11, %c0_12] : memref<8x1xf32, #tpu.memory_space<vmem>>, vector<8x1xf32>
    %15 = arith.subf %14, %13 : vector<8x1xf32>
    %16 = math.exp %15 : vector<8x1xf32>
    %c0_13 = arith.constant 0 : index
    %c0_14 = arith.constant 0 : index
    %17 = vector.load %arg9[%c0_13, %c0_14] : memref<8x1xf32, #tpu.memory_space<vmem>>, vector<8x1xf32>
    %18 = arith.mulf %16, %17 : vector<8x1xf32>
    %19 = vector.broadcast %13 : vector<8x1xf32> to vector<8x128xf32>
    %20 = arith.subf %9, %19 : vector<8x128xf32>
    %21 = math.exp %20 : vector<8x128xf32>
    %cst_15 = arith.constant dense<0.000000e+00> : vector<8xf32>
    %22 = vector.multi_reduction <add>, %21, %cst_15 [1] : vector<8x128xf32> to vector<8xf32>
    %23 = vector.shape_cast %22 : vector<8xf32> to vector<8x1xf32>
    %24 = arith.addf %18, %23 : vector<8x1xf32>
    %c0_16 = arith.constant 0 : index
    %c0_17 = arith.constant 0 : index
    %25 = vector.load %arg9[%c0_16, %c0_17] : memref<8x1xf32, #tpu.memory_space<vmem>>, vector<8x1xf32>
    tpu.vector_store %arg9[%c0_16, %c0_17], %24 {strides = array<i32>} : memref<8x1xf32, #tpu.memory_space<vmem>>, vector<8x1xf32>,
    %c0_18 = arith.constant 0 : index
    %c0_19 = arith.constant 0 : index
    %26 = vector.load %arg8[%c0_18, %c0_19] : memref<8x1xf32, #tpu.memory_space<vmem>>, vector<8x1xf32>
    tpu.vector_store %arg8[%c0_18, %c0_19], %13 {strides = array<i32>} : memref<8x1xf32, #tpu.memory_space<vmem>>, vector<8x1xf32>,
    %c128_i32 = arith.constant 128 : i32
    %27 = arith.muli %arg1, %c128_i32 : i32
    %28 = tpu.iota {dimensions = array<i32: 1>} : vector<1x128xi32>
    %29 = vector.broadcast %27 : i32 to vector<1x128xi32>
    %30 = arith.addi %29, %28 : vector<1x128xi32>
    %c0_20 = arith.constant 0 : index
    %c0_21 = arith.constant 0 : index
    %31 = vector.load %arg10[%c0_20, %c0_21] : memref<8x1xf32, #tpu.memory_space<vmem>>, vector<8x1xf32>
    %32 = vector.broadcast %30 : vector<1x128xi32> to vector<8x128xi32>
    %33 = vector.broadcast %6 : vector<8x1xi32> to vector<8x128xi32>
    %34 = arith.cmpi eq, %32, %33 : vector<8x128xi32>
    %cst_22 = arith.constant 0.000000e+00 : f32
    %35 = vector.broadcast %cst_22 : f32 to vector<8x128xf32>
    %36 = arith.select %34, %9, %35 : vector<8x128xi1>, vector<8x128xf32>
    %cst_23 = arith.constant dense<0.000000e+00> : vector<8xf32>
    %37 = vector.multi_reduction <add>, %36, %cst_23 [1] : vector<8x128xf32> to vector<8xf32>
    %38 = vector.shape_cast %37 : vector<8xf32> to vector<8x1xf32>
    %39 = arith.addf %31, %38 : vector<8x1xf32>
    %c0_24 = arith.constant 0 : index
    %c0_25 = arith.constant 0 : index
    %40 = vector.load %arg10[%c0_24, %c0_25] : memref<8x1xf32, #tpu.memory_space<vmem>>, vector<8x1xf32>
    tpu.vector_store %arg10[%c0_24, %c0_25], %39 {strides = array<i32>} : memref<8x1xf32, #tpu.memory_space<vmem>>, vector<8x1xf32>,
    %c0_i32_26 = arith.constant 0 : i32
    %41 = arith.cmpi eq, %arg1, %c0_i32_26 : i32
    %42 = arith.extui %41 : i1 to i32
    %c0_i32_27 = arith.constant 0 : i32
    %43 = arith.cmpi ne, %42, %c0_i32_27 : i32
    scf.if %43 {
      %c8_i32 = arith.constant 8 : i32
      %44 = arith.muli %arg0, %c8_i32 : i32
      %45 = tpu.iota {dimensions = array<i32: 0>} : vector<8x1xi32>
      %46 = vector.broadcast %44 : i32 to vector<8x1xi32>
      %47 = arith.addi %46, %45 : vector<8x1xi32>
      %c8_i32_28 = arith.constant 8 : i32
      %48 = vector.broadcast %c8_i32_28 : i32 to vector<8x1xi32>
      %49 = arith.cmpi slt, %47, %48 : vector<8x1xi32>
      %50 = arith.extui %49 : vector<8x1xi1> to vector<8x1xi32>
      %51 = arith.sitofp %50 : vector<8x1xi32> to vector<8x1xf32>
      %c0_29 = arith.constant 0 : index
      %c0_30 = arith.constant 0 : index
      %52 = vector.load %arg8[%c0_29, %c0_30] : memref<8x1xf32, #tpu.memory_space<vmem>>, vector<8x1xf32>
      %c0_31 = arith.constant 0 : index
      %c0_32 = arith.constant 0 : index
      %53 = vector.load %arg9[%c0_31, %c0_32] : memref<8x1xf32, #tpu.memory_space<vmem>>, vector<8x1xf32>
      %54 = math.log %53 : vector<8x1xf32>
      %55 = arith.addf %52, %54 : vector<8x1xf32>
      %c0_33 = arith.constant 0 : index
      %c0_34 = arith.constant 0 : index
      %56 = vector.load %arg10[%c0_33, %c0_34] : memref<8x1xf32, #tpu.memory_space<vmem>>, vector<8x1xf32>
      %57 = arith.subf %55, %56 : vector<8x1xf32>
      %58 = arith.mulf %57, %51 : vector<8x1xf32>
      %59 = vector.shape_cast %58 : vector<8x1xf32> to vector<1x8x1xf32>
      %cst_35 = arith.constant dense<0.000000e+00> : vector<1xf32>
      %60 = vector.multi_reduction <add>, %59, %cst_35 [1, 2] : vector<1x8x1xf32> to vector<1xf32>
      %61 = vector.shape_cast %60 : vector<1xf32> to vector<1x1x1xf32>
      %62 = vector.extract %61[0, 0, 0] : f32 from vector<1x1x1xf32>
      %c0_36 = arith.constant 0 : index
      %c0_37 = arith.constant 0 : index
      %63 = memref.load %arg6[%c0_36, %c0_37] : memref<1x1xf32, #tpu.memory_space<smem>>
      memref.store %62, %arg6[%c0_36, %c0_37] : memref<1x1xf32, #tpu.memory_space<smem>>
      %c0_38 = arith.constant 0 : index
      %c0_39 = arith.constant 0 : index
      %64 = vector.load %arg10[%c0_38, %c0_39] : memref<8x1xf32, #tpu.memory_space<vmem>>, vector<8x1xf32>
      %c0_40 = arith.constant 0 : index
      %c0_41 = arith.constant 0 : index
      %65 = vector.load %arg8[%c0_40, %c0_41] : memref<8x1xf32, #tpu.memory_space<vmem>>, vector<8x1xf32>
      %66 = arith.cmpf oge, %64, %65 : vector<8x1xf32>
      %67 = arith.extui %66 : vector<8x1xi1> to vector<8x1xi32>
      %68 = arith.sitofp %67 : vector<8x1xi32> to vector<8x1xf32>
      %69 = arith.mulf %68, %51 : vector<8x1xf32>
      %70 = vector.shape_cast %69 : vector<8x1xf32> to vector<1x8x1xf32>
      %cst_42 = arith.constant dense<0.000000e+00> : vector<1xf32>
      %71 = vector.multi_reduction <add>, %70, %cst_42 [1, 2] : vector<1x8x1xf32> to vector<1xf32>
      %72 = vector.shape_cast %71 : vector<1xf32> to vector<1x1x1xf32>
      %73 = vector.extract %72[0, 0, 0] : f32 from vector<1x1x1xf32>
      %c0_43 = arith.constant 0 : index
      %c0_44 = arith.constant 0 : index
      %74 = memref.load %arg7[%c0_43, %c0_44] : memref<1x1xf32, #tpu.memory_space<smem>>
      memref.store %73, %arg7[%c0_43, %c0_44] : memref<1x1xf32, #tpu.memory_space<smem>>
    } else {
    }
    return
  }
  func.func @transform_0(%arg0: i32, %arg1: i32) -> (i32, i32) {
    %c0_i32 = arith.constant 0 : i32
    %c0_i32_0 = arith.constant 0 : i32
    return %arg0, %c0_i32 : i32, i32
  }
  func.func @transform_1(%arg0: i32, %arg1: i32) -> (i32, i32) {
    %c0_i32 = arith.constant 0 : i32
    %c0_i32_0 = arith.constant 0 : i32
    return %c0_i32, %arg1 : i32, i32
  }
  func.func @transform_2(%arg0: i32, %arg1: i32) -> (i32, i32) {
    %c0_i32 = arith.constant 0 : i32
    %c0_i32_0 = arith.constant 0 : i32
    return %c0_i32, %arg1 : i32, i32
  }
  func.func @transform_3(%arg0: i32, %arg1: i32) -> (i32, i32) {
    %c0_i32 = arith.constant 0 : i32
    %c0_i32_0 = arith.constant 0 : i32
    return %arg0, %c0_i32 : i32, i32
  }
  func.func @transform_4(%arg0: i32, %arg1: i32) -> (i32, i32) {
    %c0_i32 = arith.constant 0 : i32
    %c0_i32_0 = arith.constant 0 : i32
    return %arg0, %c0_i32 : i32, i32
  }
  func.func @transform_5(%arg0: i32, %arg1: i32) -> (i32, i32) {
    %c0_i32 = arith.constant 0 : i32
    %c0_i32_0 = arith.constant 0 : i32
    return %arg0, %c0_i32 : i32, i32
  }
}

</mosaic_0001>

<bundles_post_ra>
// kernel: tpu_custom_call.1
= control target key start
LH: loop header
LB: loop body
LE: loop exit
PB: predicated region body
PF: predicated region fallthrough
CT: control target
= control target key end

     0   :  { %11 = vsyncpa [#allocation6], 0  ;;  %s411_s0 = inlined_call_operand.vmem [shape: bf16[8,32], index: 0, kind: input, shape index: {}]   ;;  %s412_s1 = inlined_call_operand.hbm [shape: bf16[32,128], index: 1, kind: input, shape index: {}]   ;;  %s413_s2 = inlined_call_operand.vmem [shape: f32[1,128], index: 2, kind: input, shape index: {}]   ;;  %s414_s3 = inlined_call_operand.vmem [shape: s32[8,1], index: 3, kind: input, shape index: {}]   ;;  %s415_s4 = inlined_call_operand.hbm [shape: f32[1,1], index: 4, kind: output, shape index: {0}]   ;;  %s416_s5 = inlined_call_operand.hbm [shape: f32[1,1], index: 5, kind: output, shape index: {1}]  }
   0x1   :  { %12 = vsyncpa [#allocation7], 0 }
   0x2   :  { %13 = vsyncpa [#allocation10], 0  ;;  %s313_s18 = smov [#allocation5]   ;;  %s265_s22 = scalar_lea.hbm %s412_s1, 256 }
   0x3   :  { %s21_s19 = sshll.u32 %s313_s18, 4  ;;  %p266_p0 = scmp.ne.s32.totalorder %s412_s1, %s265_s22  ;;  %s22_s19 = int_to_ptr.vmem [resolvable:$true] %s21_s19 }
   0x4   :  { %p269_p1 = scmp.lt.u32.totalorder %s265_s22, %s412_s1 }
   0x6   :  { %p271_p2 = pnand %p269_p1, %p266_p0 }
   0x8   :  { %274 = shalt.err (!%p271_p2)
}
   0x9   :  { %s275_s27 = scalar_lea.vmem %s22_s19, 256  ;;  %p280_p4 = scmp.lt.s32.totalorder %s22_s19, %s22_s19 }
   0xa   :  { %p276_p3 = scmp.ne.s32.totalorder %s22_s19, %s275_s27  ;;  %p281_p5 = scmp.lt.s32.totalorder %s275_s27, %s275_s27 }
   0xc   :  { %p282_p6 = por %p281_p5, %p280_p4 }
   0xe   :  { %p283_p7 = pnand %p282_p6, %p276_p3 }
  0x10   :  { %286 = shalt.err (!%p283_p7)
}
  0x11   :  { %s314_s28 = smov 64   ;;  %s315_s29 = smov 4  }
  0x12   :  { %27 = dma.hbm_to_vmem [thread:$0]  %s412_s1, 256, %s22_s19, [#allocation6], %s314_s28, %s314_s28, %s315_s29  }
  0x13   :  { %307 = dma.done.wait [#allocation6], 256  }
  0x14   :  { %308 = vsyncadd [#allocation6], 4294967040  ;;  %v316_v0 = vmov 0.0   ;;  %vm317_vm0 = vmmov 0   ;;  %v318_v1 = vmov 0   ;;  %v257_v2 = vld [vmem:[#allocation5] sm:$0xff]   ;;  %v137_v20 = vlaneseq }
  0x15   :  { %234 = vmatprep.subr.bf16.mxu0 %v316_v0  ;;  %238 = vmatprep.mubr.msk.bf16.mxu0 %vm317_vm0, %v316_v0  ;;  %v258_v3 = vld [vmem:[#allocation5 + $0x8] sm:$0xff]   ;;  %vm69_vm1 = vcmask 261120   ;;  %vm40_vm2 = vcmask 7168   ;;  %v319_v6 = vmov -inf   ;;  %s287_s13 = scalar_lea.hbm %s415_s4, 16 }
  0x16   :  { %256 = vset.pattern.permute.xlu1 %v318_v1  ;;  %255 = vset.pattern.permute.xlu0 %v318_v1  ;;  %v50_v4 = vld [vmem:[%s414_s3] sm:$0xff]  ;;  %41 = vst.msk [vmem:[#allocation2] sm:$0xff] %vm40_vm2, %v319_v6  ;;  %42 = vst.msk [vmem:[#allocation3] sm:$0xff] %vm40_vm2, %v316_v0  ;;  %v138_v21 = vand.u32 127, %v137_v20  ;;  %p288_p8 = scmp.ne.s32.totalorder %s415_s4, %s287_s13  ;;  %p291_p9 = scmp.lt.u32.totalorder %s287_s13, %s415_s4 }
  0x17   :  { %235 = vmatpush3.bf16.msra.mxu0 %v257_v2  ;;  %143 = vperm.xlu1 %256, %v50_v4   ;;  %v44_v5 = vld [vmem:[%s411_s0] sm:$0xf]  ;;  %43 = vst.msk [vmem:[#allocation4] sm:$0xff] %vm40_vm2, %v316_v0 }
  0x18   :  { %236 = vmatprep.subr.bf16.mxu0 %v316_v0  ;;  %v226_v7 = vld [vmem:[%s413_s2] ss:$0 sm:$0xff]  ;;  %p293_p10 = pnand %p291_p9, %p288_p8 }
  0x1b   :  { %237 = vmatpush3.bf16.msra.mxu0 %v258_v3 }
  0x1d   :  { %v115_v13 = vld [vmem:[#allocation2] sm:$0xff]  ;;  %v120_v27 = vld [vmem:[#allocation3] sm:$0xff] }
  0x1e   :  { %239 = vmatmul.mubr.msk.bf16.vlgmr.msra.gmra.mrb[0].mxu0 %vm69_vm1, %v44_v5  ;;  %v141_v31 = vld [vmem:[#allocation4] sm:$0xff] }
  0x96   :  { %v144_v22 = vpop.permute.xlu1 %143 }
  0x97   :  { %vm145_vm3 = vcmp.eq.s32.totalorder %v138_v21, %v144_v22 }
  0xf1   :  { %v107_v8 = vpop.f32.mrb[0].mxu0 }
  0xf2   :  { %v108_v9 = vadd.f32 %v226_v7, %v107_v8  ;;  %v240_v10 = vpop.f32.mrb[1].mxu0 }
  0xf3   :  { %v110_v11 = vpop.f32.mrb[2].mxu0 }
  0xf4   :  { %113 = vmax.xlane.f32.xlu0 %v108_v9  ;;  %v241_v12 = vpop.f32.mrb[3].mxu0  ;;  %v146_v24 = vsel %vm145_vm3, %v108_v9, 0.0 }
 0x181   :  { %v114_v14 = vpop.xlane.xlu0 %113 }
 0x182   :  { %v116_v15 = vmax.f32 %v115_v13, %v114_v14 }
 0x184   :  { %v117_v16 = vsub.f32 %v115_v13, %v116_v15  ;;  %135 = vst.msk [vmem:[#allocation2] sm:$0xff] %vm40_vm2, %v116_v15  ;;  %124 = vperm.xlu0 %255, %v116_v15  }
 0x186   :  { %v118_v25 = vmul.f32 1.442695, %v117_v16 }
 0x18b   :  { %v183_v36 = vld [vmem:[#allocation2] sm:$0xff] }
 0x203   :  { %v125_v17 = vpop.permute.xlu0 %124 }
 0x204   :  { %v127_v18 = vsub.f32 %v108_v9, %v125_v17 }
 0x206   :  { %v128_v19 = vmul.f32 1.442695, %v127_v18 }
 0x208   :  { %259 = vpow2.f32 %v128_v19 }
 0x209   :  { %261 = vpow2.f32 %v118_v25 }
 0x212   :  { %v260_v23 = vpop.eup %259 }
 0x213   :  { %130 = vadd.xlane.f32.xlu1 %v260_v23  ;;  %v262_v26 = vpop.eup %261 }
 0x214   :  { %v121_v28 = vmul.f32 %v262_v26, %v120_v27 }
 0x217   :  { %147 = vadd.xlane.f32.xlu1 %v146_v24 }
 0x2a0   :  { %v131_v29 = vpop.xlane.xlu1 %130 }
 0x2a1   :  { %v132_v30 = vadd.f32 %v131_v29, %v121_v28 }
 0x2a3   :  { %134 = vst.msk [vmem:[#allocation3] sm:$0xff] %vm40_vm2, %v132_v30 }
 0x2a4   :  { %v148_v32 = vpop.xlane.xlu1 %147 }
 0x2a5   :  { %v149_v33 = vadd.f32 %v148_v32, %v141_v31 }
 0x2a7   :  { %150 = vst.msk [vmem:[#allocation4] sm:$0xff] %vm40_vm2, %v149_v33 }
 0x2aa   :  { %v163_v34 = vld [vmem:[#allocation3] sm:$0xff] }
 0x2ab   :  { %263 = vlog2.f32 %v163_v34 }
 0x2ae   :  { %v182_v35 = vld [vmem:[#allocation4] sm:$0xff] }
 0x2af   :  { %vm184_vm4 = vcmp.ge.f32.partialorder %v182_v35, %v183_v36 }
 0x2b0   :  { %v230_v37 = vsel %vm184_vm4, 1.0, %v316_v0 }
 0x2b1   :  { %v188_v38 = vsel %vm40_vm2, %v230_v37, 0.0 }
 0x2b2   :  { %189 = vadd.xlane.f32.xlu0 %v188_v38 }
 0x2b5   :  { %v264_v39 = vpop.eup %263 }
 0x2b6   :  { %v165_v40 = vmul.f32 0.6931472, %v264_v39 }
 0x2b8   :  { %v166_v41 = vadd.f32 %v183_v36, %v165_v40 }
 0x2ba   :  { %v168_v42 = vsub.f32 %v166_v41, %v182_v35 }
 0x2bc   :  { %v170_v43 = vsel %vm40_vm2, %v168_v42, 0.0 }
 0x2bd   :  { %171 = vadd.xlane.f32.xlu1 %v170_v43 }
 0x33f   :  { %v190_v44 = vpop.xlane.xlu0 %189 }
 0x340   :  { %v191_v45 = vrot.slane %v190_v44, 4 }
 0x342   :  { %v192_v46 = vadd.f32 %v191_v45, %v190_v44 }
 0x344   :  { %v193_v47 = vrot.slane %v192_v46, 2 }
 0x346   :  { %v194_v51 = vadd.f32 %v193_v47, %v192_v46 }
 0x348   :  { %v195_v54 = vrot.slane %v194_v51, 1 }
 0x34a   :  { %v172_v48 = vpop.xlane.xlu1 %171  ;;  %v196_v57 = vadd.f32 %v195_v54, %v194_v51 }
 0x34b   :  { %v173_v49 = vrot.slane %v172_v48, 4 }
 0x34d   :  { %v174_v50 = vadd.f32 %v173_v49, %v172_v48 }
 0x34f   :  { %v175_v52 = vrot.slane %v174_v50, 2 }
 0x351   :  { %v176_v53 = vadd.f32 %v175_v52, %v174_v50 }
 0x353   :  { %v177_v55 = vrot.slane %v176_v53, 1 }
 0x355   :  { %v178_v56 = vadd.f32 %v177_v55, %v176_v53 }
 0x357   :  { %242 = vpush %v178_v56 }
 0x358   :  { %244 = vpush %v196_v57 }
 0x388   :  { %s243_s0 = spop %242 }
 0x389   :  { %181 = sst [smem:[#allocation8]] %s243_s0  ;;  %s245_s2 = spop %244 }
 0x38a   :  { %199 = sst [smem:[#allocation9]] %s245_s2 }
 0x38b   :  { %296 = shalt.err (!%p293_p10)
}
 0x38c   :  { %s320_s18 = smov [#allocation8]   ;;  %s297_s23 = scalar_lea.hbm %s416_s5, 16 }
 0x38d   :  { %207 = dma.smem_to_hbm %s320_s18, 16, %s415_s4, [#allocation7]  }
 0x38e   :  { %p298_p11 = scmp.ne.s32.totalorder %s416_s5, %s297_s23  ;;  %p301_p12 = scmp.lt.u32.totalorder %s297_s23, %s416_s5 }
 0x390   :  { %p303_p13 = pnand %p301_p12, %p298_p11 }
 0x392   :  { %306 = shalt.err (!%p303_p13)
}
 0x393   :  { %s321_s28 = smov [#allocation9]  }
 0x394   :  { %215 = dma.smem_to_hbm %s321_s28, 16, %s416_s5, [#allocation10]  }
 0x395   :  { %309 = dma.done.wait [#allocation7], 16  }
 0x396   :  { %310 = vsyncadd [#allocation7], 4294967280 }
 0x397   :  { %311 = dma.done.wait [#allocation10], 16  }
 0x398   :  { %312 = vsyncadd [#allocation10], 4294967280 }
 0x399   :  { %222 = sfence }
 0x39a   :  { %223 = vsyncpa [#allocation6], 1 }
 0x39b   :  { %224 = vsyncpa [#allocation7], 1 }
 0x39c   :  { %225 = vsyncpa [#allocation10], 1 }

</bundles_post_ra>
